<compile_context>
chip_gen: v6e
topology: v6e:2x2x1
jax: 0.10.0
libtpu: 0.0.40
codegen_flags: <defaults>
</compile_context>

<pallas_src>
import functools

import jax
import jax.numpy as jnp
from jax import lax
from jax.experimental import pallas as pl
from jax.experimental.pallas import tpu as pltpu


def _round_up(x, m):
    return ((x + m - 1) // m) * m


def classifier_kernel(x_ref, w_ref, b_ref, lbl_ref, *out_refs,
                      n_classes, n_rows, tile_b, with_logits):
    if with_logits:
        logits_ref, loss_ref = out_refs
    else:
        (loss_ref,) = out_refs

    # Fused linear: [tb, H] @ [H, Cp] + [1, Cp]  (== fc2(fc1(x)) exactly, no act.)
    # MXU runs in the weight dtype (bf16 in production); accumulation is f32.
    x = x_ref[...].astype(w_ref.dtype)
    logits = jnp.dot(x, w_ref[...], preferred_element_type=jnp.float32) + b_ref[...]

    if with_logits:
        logits_ref[...] = logits          # lane-dense, unmasked store

    tb, cp = logits.shape
    # Single (1, Cp) column iota, broadcast against labels -> no [tb, Cp] int temps.
    col = lax.broadcasted_iota(jnp.int32, (1, cp), 1)
    valid_col = col < n_classes

    # Stable log-softmax over the real classes only (lane padding masked out).
    neg_big = jnp.float32(-1e30)
    masked = jnp.where(valid_col, logits, neg_big)
    m = jnp.max(masked, axis=-1, keepdims=True)
    lse = m + jnp.log(jnp.sum(jnp.exp(masked - m), axis=-1, keepdims=True))
    log_probs = logits - lse

    # NLL "gather" at the label column via iota compare (no one-hot input).
    lbl = lbl_ref[...]                                           # [tb, 1] int32
    hit = jnp.logical_and(col == lbl, valid_col)                 # [tb, Cp]
    picked = jnp.sum(jnp.where(hit, log_probs, 0.0),
                     axis=-1, keepdims=True)                     # [tb, 1]

    # Zero contributions of rows beyond the real batch (ragged last block: Pallas
    # reads unspecified data there, but the select masks it out).
    row = lax.broadcasted_iota(jnp.int32, (tb, 1), 0) + pl.program_id(0) * tile_b
    nll = jnp.where(row < n_rows, -picked, 0.0)

    # Per-block partial sum (no cross-step accumulator -> batch axis is "parallel").
    block_sum = jnp.sum(nll)
    loss_ref[...] = jnp.broadcast_to(block_sum, loss_ref.shape)


def fuse_classifier_params(w1, b1, w2, b2, n_classes, *, lane=128,
                           param_dtype=jnp.bfloat16):
    """One-time prep: fold fc1 into fc2 (exact, no nonlinearity between them) and
    zero-pad the class dim to a lane-dense multiple of 128. Weights are [in, out]
    (i.e. PyTorch nn.Linear weights transposed). Weight is stored in `param_dtype`
    (bf16 by default for the MXU); the bias stays f32 (added after the matmul)."""
    w = jnp.dot(w1, w2, precision=lax.Precision.HIGHEST)          # [H, C]
    b = jnp.dot(b1, w2, precision=lax.Precision.HIGHEST) + b2     # [1, C]
    c_pad = _round_up(n_classes, lane)
    w = jnp.pad(w, ((0, 0), (0, c_pad - n_classes)))
    b = jnp.pad(b, ((0, 0), (0, c_pad - n_classes)))
    return w.astype(param_dtype), b.astype(jnp.float32)


def classifier_forward(x, w_fused, b_fused, label_ids, n_classes, *,
                       block_b=1024, compute_logits=True, slice_logits=False,
                       vmem_budget_bytes=24 * 1024 * 1024):
    """x: [B, H] encoder features. Returns {'logits', 'loss'}.

    By default the returned logits are the lane-padded [B, C_pad] buffer (no extra
    HBM pass); pass slice_logits=True to get [B, n_classes]. Pass
    compute_logits=False (e.g. training loss-only) to skip the logits stream."""
    B, H = x.shape
    c_pad = w_fused.shape[1]

    x_bytes = jnp.dtype(x.dtype).itemsize
    w_bytes = jnp.dtype(w_fused.dtype).itemsize

    # Batch tile: big enough to amortize per-grid-step overhead, capped by a
    # conservative VMEM budget (double-buffered x + logits streams + resident
    # fused weight/bias) that also fits v7x's 64 MiB VMEM / 32 MiB scoped default.
    tb = min(_round_up(B, 8), _round_up(block_b, 8))
    per_row = 2 * (H * x_bytes + (c_pad * 4 if compute_logits else 0) + 4)
    resident = H * c_pad * w_bytes + c_pad * 4
    max_rows = max(8, (vmem_budget_bytes - resident) // max(per_row, 1))
    tb = max(8, min(tb, (max_rows // 8) * 8))

    num_blocks = pl.cdiv(B, tb)          # no wrapper-side padding of x / labels

    labels = label_ids.reshape(-1).astype(jnp.int32).reshape(-1, 1)   # [B, 1]

    kernel = functools.partial(classifier_kernel, n_classes=n_classes,
                               n_rows=B, tile_b=tb, with_logits=compute_logits)

    in_specs = [
        pl.BlockSpec((tb, H), lambda i: (i, 0)),        # x rows for this block
        pl.BlockSpec((H, c_pad), lambda i: (0, 0)),     # fused weight, VMEM-resident
        pl.BlockSpec((1, c_pad), lambda i: (0, 0)),     # fused bias, VMEM-resident
        pl.BlockSpec((tb, 1), lambda i: (i, 0)),        # int32 labels for block
    ]
    loss_spec = pl.BlockSpec((1, 1, 128), lambda i: (i, 0, 0))   # per-block partial
    loss_shape = jax.ShapeDtypeStruct((num_blocks, 1, 128), jnp.float32)

    if compute_logits:
        out_specs = (pl.BlockSpec((tb, c_pad), lambda i: (i, 0)), loss_spec)
        out_shape = (jax.ShapeDtypeStruct((B, c_pad), jnp.float32), loss_shape)
    else:
        out_specs = (loss_spec,)
        out_shape = (loss_shape,)

    outs = pl.pallas_call(
        kernel,
        grid=(num_blocks,),
        in_specs=in_specs,
        out_specs=out_specs,
        out_shape=out_shape,
        compiler_params=pltpu.CompilerParams(
            # Per-block outputs are independent -> batch axis shards across
            # TensorCores on v7x; neutral on single-core v5e/v6e.
            dimension_semantics=("parallel",)),
    )(x, w_fused, b_fused, labels)

    if compute_logits:
        logits_p, loss_parts = outs
    else:
        (loss_parts,) = outs
        logits_p = None

    # Tiny wrapper-side reduction of the per-block partial sums; 1/B hoisted out
    # of the kernel as a single multiply.
    loss = jnp.sum(loss_parts[:, 0, 0]) * jnp.float32(1.0 / B)

    logits = None
    if compute_logits:
        logits = logits_p[:, :n_classes] if slice_logits else logits_p

    return {"logits": logits, "loss": loss}


if __name__ == "__main__":
    # Small shapes consistent with the module: hidden=32, n_classes=8, batch(nodes)=12.
    B, H, C = 12, 32, 8

    key = jax.random.PRNGKey(0)
    kx, kw1, kb1, kw2, kb2, kl = jax.random.split(key, 6)

    # Encoder output features (stand-in for node_encoder(...)['output'][0]).
    x = jax.random.normal(kx, (B, H), dtype=jnp.float32)

    bound = 1.0 / (H ** 0.5)
    w1 = jax.random.uniform(kw1, (H, H), minval=-bound, maxval=bound, dtype=jnp.float32)
    b1 = jax.random.uniform(kb1, (1, H), minval=-bound, maxval=bound, dtype=jnp.float32)
    w2 = jax.random.uniform(kw2, (H, C), minval=-bound, maxval=bound, dtype=jnp.float32)
    b2 = jax.random.uniform(kb2, (1, C), minval=-bound, maxval=bound, dtype=jnp.float32)

    label_ids = jax.random.randint(kl, (B,), 0, C, dtype=jnp.int32)

    # Plain-JAX reference of the original (unfused) module math.
    h_ref = jnp.dot(x, w1, precision=lax.Precision.HIGHEST) + b1
    logits_ref = jnp.dot(h_ref, w2, precision=lax.Precision.HIGHEST) + b2
    logp = jax.nn.log_softmax(logits_ref, axis=-1)
    y = jax.nn.one_hot(label_ids, C, dtype=jnp.float32)
    loss_ref = jnp.mean(-jnp.sum(y * logp, axis=-1))

    # --- Run 1: f32 params, single batch block (exact-path check). -------------
    w_f32, b_f32 = fuse_classifier_params(w1, b1, w2, b2, n_classes=C,
                                          param_dtype=jnp.float32)
    out1 = classifier_forward(x, w_f32, b_f32, label_ids, n_classes=C)
    jax.block_until_ready(out1)
    logits1 = out1["logits"][:, :C]
    assert logits1.shape == (B, C)
    assert jnp.allclose(logits1, logits_ref, atol=1e-4, rtol=1e-3), \
        float(jnp.max(jnp.abs(logits1 - logits_ref)))
    assert jnp.allclose(out1["loss"], loss_ref, atol=1e-4, rtol=1e-3), \
        (float(out1["loss"]), float(loss_ref))

    # --- Run 2: production config — bf16 MXU operands, multi-block ragged grid
    #     (block_b=8 -> 2 blocks, last block ragged; exercises the no-pad masking
    #     and the "parallel" per-block partial-loss path). -----------------------
    w_bf, b_bf = fuse_classifier_params(w1, b1, w2, b2, n_classes=C)   # bf16 weight
    out2 = classifier_forward(x, w_bf, b_bf, label_ids, n_classes=C,
                              block_b=8, slice_logits=True)
    jax.block_until_ready(out2)
    assert out2["logits"].shape == (B, C)
    assert jnp.allclose(out2["logits"], logits_ref, atol=5e-2, rtol=5e-2), \
        float(jnp.max(jnp.abs(out2["logits"] - logits_ref)))
    assert jnp.allclose(out2["loss"], loss_ref, atol=5e-2, rtol=5e-2), \
        (float(out2["loss"]), float(loss_ref))

    print("KERNEL_OK")
</pallas_src>

<mosaic_0001>
module attributes {stable_mosaic.version = 11 : i64} {
  func.func @classifier_kernel(%arg0: i32, %arg1: memref<16x32xf32, #tpu.memory_space<vmem>>, %arg2: memref<32x128xf32, #tpu.memory_space<vmem>>, %arg3: memref<1x128xf32, #tpu.memory_space<vmem>>, %arg4: memref<16x1xi32, #tpu.memory_space<vmem>>, %arg5: memref<16x128xf32, #tpu.memory_space<vmem>>, %arg6: memref<1x1x128xf32, #tpu.memory_space<vmem>>) attributes {dimension_semantics = [#tpu.dimension_semantics<parallel>], iteration_bounds = array<i64: 1>, scalar_prefetch = 0 : i64, scratch_operands = 0 : i64, tpu.core_type = #tpu.core_type<tc>, window_params = [{transform_indices = @transform_0, window_bounds = array<i64: 16, 32>}, {pipeline_mode = #tpu.pipeline_mode<synchronous>, transform_indices = @transform_1, window_bounds = array<i64: 32, 128>}, {pipeline_mode = #tpu.pipeline_mode<synchronous>, transform_indices = @transform_2, window_bounds = array<i64: 1, 128>}, {transform_indices = @transform_3, window_bounds = array<i64: 16, 1>}, {transform_indices = @transform_4, window_bounds = array<i64: 16, 128>}, {transform_indices = @transform_5, window_bounds = array<i64: 1, 1, 128>}]} {
    %c0 = arith.constant 0 : index
    %c0_0 = arith.constant 0 : index
    %0 = vector.load %arg1[%c0, %c0_0] : memref<16x32xf32, #tpu.memory_space<vmem>>, vector<16x32xf32>
    %c0_1 = arith.constant 0 : index
    %c0_2 = arith.constant 0 : index
    %1 = vector.load %arg2[%c0_1, %c0_2] : memref<32x128xf32, #tpu.memory_space<vmem>>, vector<32x128xf32>
    %cst = arith.constant dense<0.000000e+00> : vector<16x128xf32>
    %2 = tpu.matmul %0, %1, %cst {dimension_numbers = #tpu.dot_dimension_numbers<[1], [0], [0], [1], [0, 0, 1, 1], [], []>} : vector<16x32xf32>, vector<32x128xf32>, vector<16x128xf32> -> vector<16x128xf32>
    %c0_3 = arith.constant 0 : index
    %c0_4 = arith.constant 0 : index
    %3 = vector.load %arg3[%c0_3, %c0_4] : memref<1x128xf32, #tpu.memory_space<vmem>>, vector<1x128xf32>
    %4 = vector.broadcast %3 : vector<1x128xf32> to vector<16x128xf32>
    %5 = arith.addf %2, %4 : vector<16x128xf32>
    %c0_5 = arith.constant 0 : index
    %c0_6 = arith.constant 0 : index
    %6 = vector.load %arg5[%c0_5, %c0_6] : memref<16x128xf32, #tpu.memory_space<vmem>>, vector<16x128xf32>
    tpu.vector_store %arg5[%c0_5, %c0_6], %5 {strides = array<i32>} : memref<16x128xf32, #tpu.memory_space<vmem>>, vector<16x128xf32>,
    %7 = tpu.iota {dimensions = array<i32: 1>} : vector<1x128xi32>
    %c8_i32 = arith.constant 8 : i32
    %8 = vector.broadcast %c8_i32 : i32 to vector<1x128xi32>
    %9 = arith.cmpi slt, %7, %8 : vector<1x128xi32>
    %cst_7 = arith.constant -1.000000e+30 : f32
    %10 = vector.shape_cast %9 : vector<1x128xi1> to vector<1x128xi1>
    %11 = vector.broadcast %10 : vector<1x128xi1> to vector<16x128xi1>
    %12 = vector.broadcast %cst_7 : f32 to vector<16x128xf32>
    %13 = arith.select %11, %5, %12 : vector<16x128xi1>, vector<16x128xf32>
    %cst_8 = arith.constant dense<0xFF800000> : vector<16xf32>
    %14 = vector.multi_reduction <maximumf>, %13, %cst_8 [1] : vector<16x128xf32> to vector<16xf32>
    %15 = vector.shape_cast %14 : vector<16xf32> to vector<16x1xf32>
    %16 = vector.broadcast %15 : vector<16x1xf32> to vector<16x128xf32>
    %17 = arith.subf %13, %16 : vector<16x128xf32>
    %18 = math.exp %17 : vector<16x128xf32>
    %cst_9 = arith.constant dense<0.000000e+00> : vector<16xf32>
    %19 = vector.multi_reduction <add>, %18, %cst_9 [1] : vector<16x128xf32> to vector<16xf32>
    %20 = vector.shape_cast %19 : vector<16xf32> to vector<16x1xf32>
    %21 = math.log %20 : vector<16x1xf32>
    %22 = arith.addf %15, %21 : vector<16x1xf32>
    %23 = vector.broadcast %22 : vector<16x1xf32> to vector<16x128xf32>
    %24 = arith.subf %5, %23 : vector<16x128xf32>
    %c0_10 = arith.constant 0 : index
    %c0_11 = arith.constant 0 : index
    %25 = vector.load %arg4[%c0_10, %c0_11] : memref<16x1xi32, #tpu.memory_space<vmem>>, vector<16x1xi32>
    %26 = vector.broadcast %7 : vector<1x128xi32> to vector<16x128xi32>
    %27 = vector.broadcast %25 : vector<16x1xi32> to vector<16x128xi32>
    %28 = arith.cmpi eq, %26, %27 : vector<16x128xi32>
    %29 = vector.broadcast %9 : vector<1x128xi1> to vector<16x128xi1>
    %30 = arith.andi %28, %29 : vector<16x128xi1>
    %cst_12 = arith.constant 0.000000e+00 : f32
    %31 = vector.broadcast %cst_12 : f32 to vector<16x128xf32>
    %32 = arith.select %30, %24, %31 : vector<16x128xi1>, vector<16x128xf32>
    %cst_13 = arith.constant dense<0.000000e+00> : vector<16xf32>
    %33 = vector.multi_reduction <add>, %32, %cst_13 [1] : vector<16x128xf32> to vector<16xf32>
    %34 = vector.shape_cast %33 : vector<16xf32> to vector<16x1xf32>
    %35 = tpu.iota {dimensions = array<i32: 0>} : vector<16x1xi32>
    %c16_i32 = arith.constant 16 : i32
    %36 = arith.muli %arg0, %c16_i32 : i32
    %37 = vector.broadcast %36 : i32 to vector<16x1xi32>
    %38 = arith.addi %35, %37 : vector<16x1xi32>
    %c12_i32 = arith.constant 12 : i32
    %39 = vector.broadcast %c12_i32 : i32 to vector<16x1xi32>
    %40 = arith.cmpi slt, %38, %39 : vector<16x1xi32>
    %cst_14 = arith.constant 0.000000e+00 : f32
    %41 = vector.broadcast %cst_14 : f32 to vector<16x1xf32>
    %42 = arith.subf %41, %34 : vector<16x1xf32>
    %cst_15 = arith.constant 0.000000e+00 : f32
    %43 = vector.broadcast %cst_15 : f32 to vector<16x1xf32>
    %44 = arith.select %40, %42, %43 : vector<16x1xi1>, vector<16x1xf32>
    %45 = vector.shape_cast %44 : vector<16x1xf32> to vector<1x16x1xf32>
    %cst_16 = arith.constant dense<0.000000e+00> : vector<1xf32>
    %46 = vector.multi_reduction <add>, %45, %cst_16 [1, 2] : vector<1x16x1xf32> to vector<1xf32>
    %47 = vector.shape_cast %46 : vector<1xf32> to vector<1x1x1xf32>
    %48 = vector.extract %47[0, 0, 0] : f32 from vector<1x1x1xf32>
    %49 = vector.broadcast %48 : f32 to vector<1x1x128xf32>
    %c0_17 = arith.constant 0 : index
    %c0_18 = arith.constant 0 : index
    %c0_19 = arith.constant 0 : index
    %50 = vector.load %arg6[%c0_17, %c0_18, %c0_19] : memref<1x1x128xf32, #tpu.memory_space<vmem>>, vector<1x1x128xf32>
    tpu.vector_store %arg6[%c0_17, %c0_18, %c0_19], %49 {strides = array<i32>} : memref<1x1x128xf32, #tpu.memory_space<vmem>>, vector<1x1x128xf32>,
    return
  }
  func.func @transform_0(%arg0: i32) -> (i32, i32) {
    %c0_i32 = arith.constant 0 : i32
    %c0_i32_0 = arith.constant 0 : i32
    return %arg0, %c0_i32 : i32, i32
  }
  func.func @transform_1(%arg0: i32) -> (i32, i32) {
    %c0_i32 = arith.constant 0 : i32
    %c0_i32_0 = arith.constant 0 : i32
    %c0_i32_1 = arith.constant 0 : i32
    return %c0_i32, %c0_i32_0 : i32, i32
  }
  func.func @transform_2(%arg0: i32) -> (i32, i32) {
    %c0_i32 = arith.constant 0 : i32
    %c0_i32_0 = arith.constant 0 : i32
    %c0_i32_1 = arith.constant 0 : i32
    return %c0_i32, %c0_i32_0 : i32, i32
  }
  func.func @transform_3(%arg0: i32) -> (i32, i32) {
    %c0_i32 = arith.constant 0 : i32
    %c0_i32_0 = arith.constant 0 : i32
    return %arg0, %c0_i32 : i32, i32
  }
  func.func @transform_4(%arg0: i32) -> (i32, i32) {
    %c0_i32 = arith.constant 0 : i32
    %c0_i32_0 = arith.constant 0 : i32
    return %arg0, %c0_i32 : i32, i32
  }
  func.func @transform_5(%arg0: i32) -> (i32, i32, i32) {
    %c0_i32 = arith.constant 0 : i32
    %c0_i32_0 = arith.constant 0 : i32
    %c0_i32_1 = arith.constant 0 : i32
    return %arg0, %c0_i32, %c0_i32_0 : i32, i32, i32
  }
}

</mosaic_0001>

<bundles_post_ra>
// kernel: tpu_custom_call.1
= control target key start
LH: loop header
LB: loop body
LE: loop exit
PB: predicated region body
PF: predicated region fallthrough
CT: control target
= control target key end

     0   :  { %11 = vsyncpa [#allocation3], 0  ;;  %s414_s0 = inlined_call_operand.vmem [shape: f32[12,32], index: 0, kind: input, shape index: {}]   ;;  %s415_s1 = inlined_call_operand.hbm [shape: f32[32,128], index: 1, kind: input, shape index: {}]   ;;  %s416_s2 = inlined_call_operand.vmem [shape: f32[1,128], index: 2, kind: input, shape index: {}]   ;;  %s417_s3 = inlined_call_operand.vmem [shape: s32[12,1], index: 3, kind: input, shape index: {}]   ;;  %s418_s4 = inlined_call_operand.hbm [shape: f32[12,128], index: 4, kind: output, shape index: {0}]   ;;  %s419_s5 = inlined_call_operand.hbm [shape: f32[1,1,128], index: 5, kind: output, shape index: {1}]  }
   0x1   :  { %12 = vsyncpa [#allocation4], 0 }
   0x2   :  { %13 = vsyncpa [#allocation7], 0  ;;  %s342_s18 = smov [#allocation2]  }
   0x3   :  { %s21_s19 = sshll.u32 %s342_s18, 4  ;;  %s22_s19 = int_to_ptr.vmem [resolvable:$true] %s21_s19 }
   0x4   :  { %s284_s20 = scalar_lea.vmem %s22_s19, 512  ;;  %p289_p1 = scmp.lt.s32.totalorder %s22_s19, %s22_s19 }
   0x5   :  { %p285_p0 = scmp.ne.s32.totalorder %s22_s19, %s284_s20  ;;  %p290_p2 = scmp.lt.s32.totalorder %s284_s20, %s284_s20 }
   0x7   :  { %p291_p3 = por %p290_p2, %p289_p1 }
   0x9   :  { %p292_p4 = pnand %p291_p3, %p285_p0 }
   0xb   :  { %295 = shalt.err (!%p292_p4)
}
   0xc   :  { %s343_s21 = smov 128   ;;  %s344_s22 = smov 8  }
   0xd   :  { %27 = dma.hbm_to_vmem [thread:$0]  %s415_s1, 512, %s22_s19, [#allocation3], %s343_s21, %s343_s21, %s344_s22  }
   0xe   :  { %336 = dma.done.wait [#allocation3], 512  }
   0xf   :  { %337 = vsyncadd [#allocation3], 4294966784  ;;  %vm48_vm0 = vcmask 261120   ;;  %v40_v0 = vld [vmem:[#allocation2 + $0x18] sm:$0xff]  ;;  %v39_v1 = vld [vmem:[#allocation2 + $0x10] sm:$0xff]  ;;  %v132_v6 = vlaneseq  ;;  %v345_v16 = vmov 0  }
  0x10   :  { %247 = vmatprep.subr.mxu0 %v40_v0  ;;  %v35_v2 = vld [vmem:[%s414_s0] sm:$0xff]  ;;  %v38_v3 = vld [vmem:[#allocation2 + $0x8] sm:$0xff]  ;;  %266 = vset.pattern.permute.xlu0 %v345_v16  ;;  %vm192_vm7 = vcmask 7168  }
  0x11   :  { %248 = vmatpush3.msra.mxu0 %v40_v0  ;;  %255 = vmatprep.mubr.msk.f32.mxu0 %vm48_vm0, %v35_v2  ;;  %v37_v4 = vld [vmem:[#allocation2] sm:$0xff]  ;;  %v36_v5 = vld [vmem:[%s414_s0 + $0x8] sm:$0xff]  ;;  %v133_v7 = vand.u32 127, %v132_v6  ;;  %v180_v40 = vshrl.u32 %v132_v6, 7 }
  0x12   :  { %249 = vmatprep.subr.mxu0 %v39_v1  ;;  %v238_v8 = vld [vmem:[%s416_s2] ss:$0 sm:$0xff]  ;;  %v162_v15 = vld [vmem:[%s417_s3 + $0x8] sm:$0xff]  ;;  %267 = vset.pattern.permute.xlu1 %v345_v16 }
  0x13   :  { %250 = vmatpush3.msra.mxu0 %v39_v1  ;;  %vm134_vm1 = vcmp.lt.s32.totalorder %v133_v7, 8  ;;  %v161_v25 = vld [vmem:[%s417_s3] sm:$0xff]  ;;  %v181_v41 = vadd.s32 8, %v180_v40  ;;  %s346_s3 = smov [#allocation5]  }
  0x14   :  { %251 = vmatprep.subr.mxu0 %v38_v3  ;;  %s212_s7 = sshll.u32 %s346_s3, 4  ;;  %s213_s7 = int_to_ptr.vmem [resolvable:$true] %s212_s7 }
  0x15   :  { %252 = vmatpush3.msra.mxu0 %v38_v3  ;;  %vm187_vm6 = vcmp.lt.s32.totalorder %v181_v41, 12  ;;  %s296_s8 = scalar_lea.vmem %s213_s7, 256  ;;  %p301_p6 = scmp.lt.s32.totalorder %s213_s7, %s213_s7 }
  0x16   :  { %253 = vmatprep.subr.mxu0 %v37_v4  ;;  %p297_p5 = scmp.ne.s32.totalorder %s213_s7, %s296_s8  ;;  %p302_p7 = scmp.lt.s32.totalorder %s296_s8, %s296_s8 }
  0x17   :  { %254 = vmatpush3.msra.mxu0 %v37_v4 }
  0x18   :  { %256 = vmatmul.mubr.msk.f32.vlgmr.msra.gmra.mxu0 %vm48_vm0, %v36_v5  ;;  %p303_p8 = por %p302_p7, %p301_p6 }
  0x1a   :  { %p304_p9 = pnand %p303_p8, %p297_p5 }
  0xd8   :  { %v257_v9 = vpop.f32.mrf.mxu0 }
  0xd9   :  { %v127_v10 = vadd.f32 %v257_v9, %v238_v8 }
  0xda   :  { %v121_v11 = vpop.f32.mrf.mxu0 }
  0xdb   :  { %131 = vst [vmem:[#allocation5 + $0x8] sm:$0xff] %v127_v10  ;;  %v122_v12 = vadd.f32 %v238_v8, %v121_v11  ;;  %v138_v13 = vsel %vm134_vm1, %v127_v10, -1e+30 }
  0xdc   :  { %141 = vmax.xlane.f32.xlu0 %v138_v13 }
  0xdd   :  { %130 = vst [vmem:[#allocation5] sm:$0xff] %v122_v12  ;;  %v137_v14 = vsel %vm134_vm1, %v122_v12, -1e+30 }
  0xe0   :  { %139 = vmax.xlane.f32.xlu0 %v137_v14 }
  0xf6   :  { %167 = vperm.xlu0 %266, %v162_v15  }
 0x165   :  { %v142_v17 = vpop.xlane.xlu0 %141 }
 0x166   :  { %v144_v18 = vsub.f32 %v138_v13, %v142_v17 }
 0x168   :  { %v147_v19 = vmul.f32 1.442695, %v144_v18 }
 0x169   :  { %v140_v20 = vpop.xlane.xlu0 %139 }
 0x16a   :  { %268 = vpow2.f32 %v147_v19  ;;  %v143_v21 = vsub.f32 %v137_v14, %v140_v20 }
 0x16c   :  { %v145_v22 = vmul.f32 1.442695, %v143_v21 }
 0x16e   :  { %270 = vpow2.f32 %v145_v22 }
 0x171   :  { %v168_v28 = vpop.permute.xlu0 %167 }
 0x172   :  { %vm170_vm2 = vcmp.eq.s32.totalorder %v133_v7, %v168_v28 }
 0x173   :  { %vm172_vm3 = vmand %vm170_vm2, %vm134_vm1 }
 0x177   :  { %v269_v23 = vpop.eup %268 }
 0x178   :  { %151 = vadd.xlane.f32.xlu1 %v269_v23 }
 0x17b   :  { %v271_v24 = vpop.eup %270 }
 0x17c   :  { %149 = vadd.xlane.f32.xlu1 %v271_v24 }
 0x18d   :  { %164 = vperm.xlu1 %267, %v161_v25  }
 0x201   :  { %v152_v26 = vpop.xlane.xlu1 %151 }
 0x202   :  { %272 = vlog2.f32 %v152_v26 }
 0x205   :  { %v150_v27 = vpop.xlane.xlu1 %149 }
 0x206   :  { %274 = vlog2.f32 %v150_v27 }
 0x209   :  { %v165_v31 = vpop.permute.xlu1 %164 }
 0x20a   :  { %vm169_vm4 = vcmp.eq.s32.totalorder %v133_v7, %v165_v31 }
 0x20b   :  { %vm171_vm5 = vmand %vm169_vm4, %vm134_vm1 }
 0x20f   :  { %v273_v29 = vpop.eup %272 }
 0x210   :  { %v156_v30 = vmul.f32 0.6931472, %v273_v29 }
 0x212   :  { %v158_v32 = vadd.f32 %v156_v30, %v142_v17 }
 0x213   :  { %v275_v33 = vpop.eup %274 }
 0x214   :  { %v154_v34 = vmul.f32 0.6931472, %v275_v33  ;;  %v160_v35 = vsub.f32 %v127_v10, %v158_v32 }
 0x216   :  { %v174_v36 = vsel %vm172_vm3, %v160_v35, 0.0  ;;  %v157_v37 = vadd.f32 %v154_v34, %v140_v20 }
 0x217   :  { %177 = vadd.xlane.f32.xlu1 %v174_v36 }
 0x218   :  { %v159_v38 = vsub.f32 %v122_v12, %v157_v37 }
 0x21a   :  { %v173_v39 = vsel %vm171_vm5, %v159_v38, 0.0 }
 0x21b   :  { %175 = vadd.xlane.f32.xlu0 %v173_v39 }
 0x2a0   :  { %v178_v42 = vpop.xlane.xlu1 %177 }
 0x2a1   :  { %v189_v43 = vsub.f32 0.0, %v178_v42 }
 0x2a3   :  { %v191_v44 = vsel %vm187_vm6, %v189_v43, 0.0 }
 0x2a4   :  { %v176_v45 = vpop.xlane.xlu0 %175  ;;  %v194_v48 = vsel %vm192_vm7, %v191_v44, 0.0 }
 0x2a5   :  { %v188_v46 = vsub.f32 0.0, %v176_v45 }
 0x2a7   :  { %v193_v47 = vsel %vm192_vm7, %v188_v46, 0.0 }
 0x2a8   :  { %v195_v49 = vadd.f32 %v194_v48, %v193_v47 }
 0x2aa   :  { %196 = vadd.xlane.f32.xlu1 %v195_v49 }
 0x2ab   :  { %307 = shalt.err (!%p304_p9)
}
 0x2ac   :  { %218 = dma.vmem_to_hbm [thread:$0]  %s213_s7, 256, %s418_s4, [#allocation4], %s343_s21, %s343_s21, %s344_s22  }
 0x2ad   :  { %s347_s11 = smov [#allocation6]  }
 0x2ae   :  { %s225_s12 = sshll.u32 %s347_s11, 4  ;;  %s226_s12 = int_to_ptr.vmem [resolvable:$true] %s225_s12 }
 0x2af   :  { %s316_s14 = scalar_lea.vmem %s226_s12, 16  ;;  %s320_s15 = scalar_lea.vmem %s226_s12, 32 }
 0x2b0   :  { %p317_p10 = scmp.ne.s32.totalorder %s226_s12, %s316_s14  ;;  %p321_p11 = scmp.lt.s32.totalorder %s226_s12, %s226_s12 }
 0x2b1   :  { %p322_p12 = scmp.lt.s32.totalorder %s320_s15, %s316_s14 }
 0x2b3   :  { %p323_p13 = por %p322_p12, %p321_p11 }
 0x2b5   :  { %p324_p0 = pnand %p323_p13, %p317_p10 }
 0x333   :  { %v197_v50 = vpop.xlane.xlu1 %196 }
 0x334   :  { %v198_v51 = vrot.slane %v197_v50, 4 }
 0x336   :  { %v199_v52 = vadd.f32 %v198_v51, %v197_v50 }
 0x338   :  { %v200_v53 = vrot.slane %v199_v52, 2 }
 0x33a   :  { %v201_v54 = vadd.f32 %v200_v53, %v199_v52 }
 0x33c   :  { %v202_v55 = vrot.slane %v201_v54, 1 }
 0x33e   :  { %v203_v56 = vadd.f32 %v202_v55, %v201_v54 }
 0x340   :  { %258 = vpush %v203_v56 }
 0x371   :  { %s259_s13 = spop %258 }
 0x372   :  { %v205_v57 = vstv %s259_s13 }
 0x373   :  { %206 = vst [vmem:[#allocation6] sm:$0x1] %v205_v57 }
 0x374   :  { %327 = shalt.err (!%p324_p0)
}
 0x375   :  { %228 = dma.vmem_to_hbm [thread:$0]  %s226_s12, 16, %s419_s5, [#allocation7]  }
 0x376   :  { %338 = dma.done.wait [#allocation4], 256  }
 0x377   :  { %339 = vsyncadd [#allocation4], 4294967040 }
 0x378   :  { %340 = dma.done.wait [#allocation7], 16  }
 0x379   :  { %341 = vsyncadd [#allocation7], 4294967280 }
 0x37a   :  { %235 = vsyncpa [#allocation3], 1 }
 0x37b   :  { %236 = vsyncpa [#allocation4], 1 }
 0x37c   :  { %237 = vsyncpa [#allocation7], 1 }

</bundles_post_ra>
